<compile_context>
chip_gen: v7x
topology: tpu7x:2x2x1
jax: 0.10.0
libtpu: 0.0.40
codegen_flags: <defaults>
</compile_context>

<pallas_src>
import jax
import jax.numpy as jnp
from jax.experimental import pallas as pl
from jax.experimental.pallas import tpu as pltpu

_MIB = 1024 * 1024


def _round_up(x, m):
    return ((x + m - 1) // m) * m


def _sublane_multiple(dtype):
    # Minimum second-to-last tile multiple: 8 for 32-bit, 16 for 16-bit,
    # 32 for 8-bit dtypes (sublane packing).
    return max(8, 32 // jnp.dtype(dtype).itemsize)


def _vmem_capacity_bytes():
    # Physical VMEM (v5e/v6e: 128 MiB, v7x: 64 MiB per TensorCore).
    try:
        info = pltpu.get_tpu_info()
        cap = int(getattr(info, "vmem_capacity_bytes", 0) or 0)
        if cap > 0:
            return cap
    except Exception:
        pass
    return 64 * _MIB  # conservative: safe on every generation


def _largest_aligned_divisor(dim, target, align):
    """Largest t <= target with t % align == 0 and dim % t == 0, or None."""
    t = (min(target, dim) // align) * align
    while t >= align:
        if dim % t == 0:
            return t
        t -= align
    return None


def _choose_tile(dim, target, align):
    """Pick a tile size for `dim`. Returns (tile, padded_dim)."""
    if dim <= target:
        return dim, dim                      # full-dim block: always legal, no pad
    t = _largest_aligned_divisor(dim, target, align)
    if t is not None:
        return t, dim                        # exact divisor: no padding needed
    t = max(align, (target // align) * align)
    return t, _round_up(dim, t)              # padding fallback (rare)


def _linear_kernel_f32(x_ref, w_ref, b_ref, o_ref):
    # f32 output: accumulate directly into the resident output block
    # (saves the scratch accumulator and the epilogue copy).
    @pl.when(pl.program_id(2) == 0)
    def _():
        o_ref[...] = jnp.broadcast_to(b_ref[...], o_ref.shape).astype(o_ref.dtype)

    o_ref[...] += jnp.dot(x_ref[...], w_ref[...],
                          preferred_element_type=jnp.float32)


def _linear_kernel_acc(x_ref, w_ref, b_ref, o_ref, acc_ref):
    # Non-f32 output: f32 scratch accumulator, bias-initialized at k==0,
    # single cast/store epilogue at k==last.
    k = pl.program_id(2)

    @pl.when(k == 0)
    def _():
        acc_ref[...] = jnp.broadcast_to(
            b_ref[...].astype(jnp.float32), acc_ref.shape)

    acc_ref[...] += jnp.dot(x_ref[...], w_ref[...],
                            preferred_element_type=jnp.float32)

    @pl.when(k == pl.num_programs(2) - 1)
    def _():
        o_ref[...] = acc_ref[...].astype(o_ref.dtype)


def linear_head(x, weight_t, bias, *, tm=None, tn=None, tk=None):
    """out = x @ weight_t + bias  (PyTorch nn.Linear forward).

    x:        (B, in_features)
    weight_t: (in_features, out_features)   (transpose of PyTorch's weight)
    bias:     (out_features,)
    """
    B, in_f = x.shape
    k_dim, out_f = weight_t.shape
    assert k_dim == in_f, "weight_t must be (in_features, out_features)"
    out_dtype = x.dtype

    x_dsize = jnp.dtype(x.dtype).itemsize
    w_dsize = jnp.dtype(weight_t.dtype).itemsize
    b_dsize = jnp.dtype(bias.dtype).itemsize
    o_dsize = jnp.dtype(out_dtype).itemsize
    sub_m = _sublane_multiple(x.dtype)

    cap = _vmem_capacity_bytes()
    headroom = 16 * _MIB
    tile_budget = min(max(cap - 2 * headroom, 24 * _MIB), 96 * _MIB)
    big_vmem = cap >= 96 * _MIB            # v5e/v6e (128 MiB) vs v7x (64 MiB)

    tn_explicit = tn is not None
    tm_t = 512 if tm is None else tm
    tn_t = (2048 if big_vmem else 1024) if tn is None else tn
    tk_t = (2048 if big_vmem else 1024) if tk is None else tk

    use_acc = out_dtype != jnp.float32

    # Select tiles; shrink the W-tile dims first if the footprint overflows.
    while True:
        tm_s, Mp = _choose_tile(B, tm_t, sub_m)
        tn_s, Np = _choose_tile(out_f, tn_t, 128)
        tk_s, Kp = _choose_tile(in_f, tk_t, 128)
        footprint = (
            2 * tm_s * tk_s * x_dsize          # x double buffer
            + 2 * tk_s * tn_s * w_dsize        # W double buffer (dominant)
            + 2 * tn_s * b_dsize               # bias double buffer
            + 2 * tm_s * tn_s * o_dsize        # output double buffer
            + (tm_s * tn_s * 4 if use_acc else 0))
        if footprint <= tile_budget:
            break
        if tk_t >= tn_t and tk_t > 128:
            tk_t //= 2
        elif tn_t > 128:
            tn_t //= 2
        elif tm_t > sub_m:
            tm_t = max(sub_m, tm_t // 2)
        else:
            break

    # v7x has two TensorCores: if both "parallel" axes collapsed to a single
    # block, re-split N so the second core gets work (N blocks see disjoint
    # weight columns, so W HBM traffic is unchanged).
    if (not tn_explicit and Mp // tm_s == 1 and Np // tn_s == 1
            and out_f >= 256):
        t = _largest_aligned_divisor(out_f, out_f // 2, 128)
        if t is not None:
            tn_s = t

    # Pad only when a dimension could not be tiled exactly.  Zeros along K are
    # numerically inert; padded M rows / N cols are sliced off afterwards.
    x_p = x if (Mp == B and Kp == in_f) else jnp.pad(
        x, ((0, Mp - B), (0, Kp - in_f)))
    w_p = weight_t if (Kp == in_f and Np == out_f) else jnp.pad(
        weight_t, ((0, Kp - in_f), (0, Np - out_f)))
    b_p = (bias if Np == out_f else jnp.pad(bias, (0, Np - out_f))).reshape(1, Np)

    grid = (Mp // tm_s, Np // tn_s, Kp // tk_s)

    # Advisory cost: x is re-read once per N block, W once per M block.
    cost = pl.CostEstimate(
        flops=2 * Mp * Np * Kp,
        transcendentals=0,
        bytes_accessed=(Mp * Kp * x_dsize * grid[1]
                        + Kp * Np * w_dsize * grid[0]
                        + Np * b_dsize
                        + Mp * Np * o_dsize),
    )

    # Footprint + margin for compiler-internal scratch, never full physical.
    vmem_limit = int(min(cap - headroom, footprint + 2 * headroom))

    kernel = _linear_kernel_acc if use_acc else _linear_kernel_f32
    scratch = [pltpu.VMEM((tm_s, tn_s), jnp.float32)] if use_acc else []

    out_p = pl.pallas_call(
        kernel,
        out_shape=jax.ShapeDtypeStruct((Mp, Np), out_dtype),
        grid_spec=pltpu.PrefetchScalarGridSpec(
            num_scalar_prefetch=0,
            grid=grid,
            in_specs=[
                pl.BlockSpec((tm_s, tk_s), lambda i, j, k: (i, k)),
                pl.BlockSpec((tk_s, tn_s), lambda i, j, k: (k, j)),
                pl.BlockSpec((1, tn_s), lambda i, j, k: (0, j)),
            ],
            out_specs=pl.BlockSpec((tm_s, tn_s), lambda i, j, k: (i, j)),
            scratch_shapes=scratch,
        ),
        compiler_params=pltpu.CompilerParams(
            dimension_semantics=("parallel", "parallel", "arbitrary"),
            vmem_limit_bytes=vmem_limit,
        ),
        cost_estimate=cost,
    )(x_p, w_p, b_p)

    if Mp == B and Np == out_f:
        return out_p
    return out_p[:B, :out_f]


if __name__ == "__main__":
    key = jax.random.PRNGKey(0)
    keys = jax.random.split(key, 9)

    # 1) Tiny head (single-tile grid, full-dim blocks, no padding).
    B, in_f, out_f = 8, 32, 16
    bound = 1.0 / (in_f ** 0.5)
    x = jax.random.normal(keys[0], (B, in_f), dtype=jnp.float32)
    w_t = jax.random.uniform(keys[1], (in_f, out_f), minval=-bound,
                             maxval=bound, dtype=jnp.float32)
    b = jax.random.uniform(keys[2], (out_f,), minval=-bound, maxval=bound,
                           dtype=jnp.float32)
    out = linear_head(x, w_t, b)
    jax.block_until_ready(out)
    ref = x @ w_t + b
    assert out.shape == (B, out_f)
    assert jnp.allclose(out, ref, atol=1e-5, rtol=1e-5)

    # 2) Multi-tile grid (M, N and K each > 1 block) with explicit small
    #    tiles, exercising the in-place f32 accumulation + bias-init path.
    B2, in2, out2 = 32, 512, 384
    bound2 = 1.0 / (in2 ** 0.5)
    x2 = jax.random.normal(keys[3], (B2, in2), dtype=jnp.float32)
    w2 = jax.random.uniform(keys[4], (in2, out2), minval=-bound2,
                            maxval=bound2, dtype=jnp.float32)
    b2 = jax.random.uniform(keys[5], (out2,), minval=-bound2, maxval=bound2,
                            dtype=jnp.float32)
    out2_arr = linear_head(x2, w2, b2, tm=8, tn=128, tk=128)
    jax.block_until_ready(out2_arr)
    ref2 = x2 @ w2 + b2
    assert out2_arr.shape == (B2, out2)
    assert jnp.allclose(out2_arr, ref2, atol=1e-4, rtol=1e-4)

    # 3) bf16 inputs / bf16 output with f32 accumulation (scratch path,
    #    dtype-aware sublane rounding, multi-block K).
    B3, in3, out3 = 16, 256, 128
    bound3 = 1.0 / (in3 ** 0.5)
    x3 = jax.random.normal(keys[6], (B3, in3), dtype=jnp.bfloat16)
    w3 = jax.random.uniform(keys[7], (in3, out3), minval=-bound3,
                            maxval=bound3).astype(jnp.bfloat16)
    b3 = jax.random.uniform(keys[8], (out3,), minval=-bound3,
                            maxval=bound3).astype(jnp.bfloat16)
    out3_arr = linear_head(x3, w3, b3, tk=128)
    jax.block_until_ready(out3_arr)
    ref3 = (x3.astype(jnp.float32) @ w3.astype(jnp.float32)
            + b3.astype(jnp.float32))
    assert out3_arr.shape == (B3, out3)
    assert out3_arr.dtype == jnp.bfloat16
    assert jnp.allclose(out3_arr.astype(jnp.float32), ref3,
                        atol=5e-2, rtol=5e-2)

    print("KERNEL_OK")
</pallas_src>

<mosaic_0001>
module attributes {stable_mosaic.version = 11 : i64} {
  func.func @_linear_kernel_f32(%arg0: i32, %arg1: i32, %arg2: i32, %arg3: memref<8x32xf32, #tpu.memory_space<vmem>>, %arg4: memref<32x16xf32, #tpu.memory_space<vmem>>, %arg5: memref<1x16xf32, #tpu.memory_space<vmem>>, %arg6: memref<8x16xf32, #tpu.memory_space<vmem>>) attributes {dimension_semantics = [#tpu.dimension_semantics<parallel>, #tpu.dimension_semantics<parallel>, #tpu.dimension_semantics<arbitrary>], iteration_bounds = array<i64: 1, 1, 1>, scalar_prefetch = 0 : i64, scratch_operands = 0 : i64, tpu.core_type = #tpu.core_type<tc>, window_params = [{transform_indices = @transform_0, window_bounds = array<i64: 8, 32>}, {transform_indices = @transform_1, window_bounds = array<i64: 32, 16>}, {transform_indices = @transform_2, window_bounds = array<i64: 1, 16>}, {transform_indices = @transform_3, window_bounds = array<i64: 8, 16>}]} {
    %c0_i32 = arith.constant 0 : i32
    %0 = arith.cmpi eq, %arg2, %c0_i32 : i32
    %1 = arith.extui %0 : i1 to i32
    %c0_i32_0 = arith.constant 0 : i32
    %2 = arith.cmpi ne, %1, %c0_i32_0 : i32
    scf.if %2 {
      %c0_8 = arith.constant 0 : index
      %c0_9 = arith.constant 0 : index
      %9 = vector.load %arg5[%c0_8, %c0_9] : memref<1x16xf32, #tpu.memory_space<vmem>>, vector<1x16xf32>
      %10 = vector.shape_cast %9 : vector<1x16xf32> to vector<1x16xf32>
      %11 = vector.broadcast %10 : vector<1x16xf32> to vector<8x16xf32>
      %c0_10 = arith.constant 0 : index
      %c0_11 = arith.constant 0 : index
      %12 = vector.load %arg6[%c0_10, %c0_11] : memref<8x16xf32, #tpu.memory_space<vmem>>, vector<8x16xf32>
      tpu.vector_store %arg6[%c0_10, %c0_11], %11 {strides = array<i32>} : memref<8x16xf32, #tpu.memory_space<vmem>>, vector<8x16xf32>,
    } else {
    }
    %c0 = arith.constant 0 : index
    %c0_1 = arith.constant 0 : index
    %3 = vector.load %arg6[%c0, %c0_1] : memref<8x16xf32, #tpu.memory_space<vmem>>, vector<8x16xf32>
    %c0_2 = arith.constant 0 : index
    %c0_3 = arith.constant 0 : index
    %4 = vector.load %arg3[%c0_2, %c0_3] : memref<8x32xf32, #tpu.memory_space<vmem>>, vector<8x32xf32>
    %c0_4 = arith.constant 0 : index
    %c0_5 = arith.constant 0 : index
    %5 = vector.load %arg4[%c0_4, %c0_5] : memref<32x16xf32, #tpu.memory_space<vmem>>, vector<32x16xf32>
    %cst = arith.constant dense<0.000000e+00> : vector<8x16xf32>
    %6 = tpu.matmul %4, %5, %cst {dimension_numbers = #tpu.dot_dimension_numbers<[1], [0], [0], [1], [0, 0, 1, 1], [], []>} : vector<8x32xf32>, vector<32x16xf32>, vector<8x16xf32> -> vector<8x16xf32>
    %7 = arith.addf %3, %6 : vector<8x16xf32>
    %c0_6 = arith.constant 0 : index
    %c0_7 = arith.constant 0 : index
    %8 = vector.load %arg6[%c0_6, %c0_7] : memref<8x16xf32, #tpu.memory_space<vmem>>, vector<8x16xf32>
    tpu.vector_store %arg6[%c0_6, %c0_7], %7 {strides = array<i32>} : memref<8x16xf32, #tpu.memory_space<vmem>>, vector<8x16xf32>,
    return
  }
  func.func @transform_0(%arg0: i32, %arg1: i32, %arg2: i32) -> (i32, i32) {
    %c0_i32 = arith.constant 0 : i32
    return %arg0, %arg2 : i32, i32
  }
  func.func @transform_1(%arg0: i32, %arg1: i32, %arg2: i32) -> (i32, i32) {
    %c0_i32 = arith.constant 0 : i32
    return %arg2, %arg1 : i32, i32
  }
  func.func @transform_2(%arg0: i32, %arg1: i32, %arg2: i32) -> (i32, i32) {
    %c0_i32 = arith.constant 0 : i32
    %c0_i32_0 = arith.constant 0 : i32
    return %c0_i32, %arg1 : i32, i32
  }
  func.func @transform_3(%arg0: i32, %arg1: i32, %arg2: i32) -> (i32, i32) {
    %c0_i32 = arith.constant 0 : i32
    return %arg0, %arg1 : i32, i32
  }
}

</mosaic_0001>

<bundles_post_ra>
// kernel: tpu_custom_call.1
= control target key start
LH: loop header
LB: loop body
LE: loop exit
PB: predicated region body
PF: predicated region fallthrough
CT: control target
= control target key end

     0   :  { %v177_v3 = vmov 0.0|0.0   ;;  %vm178_vm0 = vmmov 0   ;;  %v179_v6 = vmov 0.0   ;;  %vm26_vm1 = vcmask 130048   ;;  %s233_s0 = inlined_call_operand.vmem [shape: f32[8,32], index: 0, kind: input, shape index: {}]   ;;  %s234_s1 = inlined_call_operand.vmem [shape: f32[32,16], index: 1, kind: input, shape index: {}]   ;;  %s235_s2 = inlined_call_operand.vmem [shape: f32[1,16], index: 2, kind: input, shape index: {}]   ;;  %s236_s3 = inlined_call_operand.hbm [shape: f32[8,16], index: 3, kind: output, shape index: {}]  }
   0x1   :  { %v30_v0 = vld [vmem:[%s234_s1] sm:$0xff]  ;;  %v31_v1 = vld [vmem:[%s234_s1 + $0x8] sm:$0xff]  ;;  %v32_v2 = vld [vmem:[%s234_s1 + $0x10] sm:$0xff]  ;;  %143 = vmatprep.subr.bf16.mxu0 %v177_v3  ;;  %140 = vmatprep.mubr.msk.f32.mxu0 %vm178_vm0, %v179_v6 }
   0x2   :  { %v144_v4 = vpack.c.bf16 %v31_v1, %v30_v0  ;;  %v33_v5 = vld [vmem:[%s234_s1 + $0x18] sm:$0xff]  ;;  %v125_v7 = vld [vmem:[%s235_s2] ss:$0 sm:$0xff] }
   0x3   :  { %27 = vst.msk [vmem:[#allocation2] sm:$0xff] %vm26_vm1, %v125_v7 }
   0x4   :  { %8 = vsyncpa [#allocation3], 0  ;;  %145 = vmatpush3.bf16.msra.mxu0 %v144_v4  ;;  %v147_v8 = vpack.c.bf16 %v33_v5, %v32_v2  ;;  %v29_v9 = vld [vmem:[%s233_s0] sm:$0xff]  ;;  %vm34_vm2 = vcmask 261120   ;;  %s180_s1 = smov [#allocation2]  }
   0x5   :  { %146 = vmatprep.subr.bf16.mxu0 %v177_v3  ;;  %s117_s24 = sshll.u32 %s180_s1, 4  ;;  %s118_s24 = int_to_ptr.vmem [resolvable:$true] %s117_s24 }
   0x6   :  { %s153_s2 = scalar_lea.vmem %s118_s24, 128  ;;  %p158_p1 = scmp.lt.s32.totalorder %s118_s24, %s118_s24 }
   0x7   :  { %p154_p0 = scmp.ne.s32.totalorder %s118_s24, %s153_s2  ;;  %p159_p2 = scmp.lt.s32.totalorder %s153_s2, %s153_s2 }
   0x8   :  { %148 = vmatpush3.bf16.msra.mxu0 %v147_v8 }
   0x9   :  { %p160_p3 = por %p159_p2, %p158_p1 }
   0xa   :  { %v28_v10 = vld [vmem:[#allocation2] sm:$0xff] }
   0xb   :  { %141 = vmatmul.mubr.msk.f32.vlgmr.msra.gmra.mrb[0].mxu0 %vm34_vm2, %v29_v9  ;;  %p161_p4 = pnand %p160_p3, %p154_p0 }
  0xde   :  { %v104_v11 = vpop.f32.mrb[0].mxu0 }
  0xdf   :  { %v108_v12 = vadd.f32 %v104_v11, %v28_v10  ;;  %v142_v13 = vpop.f32.mrb[1].mxu0 }
  0xe1   :  { %110 = vst.msk [vmem:[#allocation2] sm:$0xff] %vm26_vm1, %v108_v12 }
  0xe2   :  { %164 = shalt.err (!%p161_p4)
}
  0xe3   :  { %s165_s26 = scalar_lea.hbm %s236_s3, 128 }
  0xe4   :  { %p166_p5 = scmp.ne.s32.totalorder %s236_s3, %s165_s26  ;;  %p169_p6 = scmp.lt.u32.totalorder %s165_s26, %s236_s3 }
  0xe6   :  { %p171_p7 = pnand %p169_p6, %p166_p5 }
  0xe8   :  { %174 = shalt.err (!%p171_p7)
}
  0xe9   :  { %120 = dma.vmem_to_hbm [thread:$0]  %s118_s24, 128, %s236_s3, [#allocation3]  }
  0xea   :  { %175 = dma.done.wait [#allocation3], 128  }
  0xeb   :  { %176 = vsyncadd [#allocation3], 4294967168 }
  0xec   :  { %124 = vsyncpa [#allocation3], 1 }

</bundles_post_ra>
